<compile_context>
chip_gen: v5e
topology: v5e:2x2
jax: 0.10.0
libtpu: 0.0.40
codegen_flags: <defaults>
</compile_context>

<pallas_src>
import functools

import jax
import jax.numpy as jnp
from jax import lax
from jax.experimental import pallas as pl
from jax.experimental.pallas import tpu as pltpu

LN_EPS = 1e-5


def _round_up(x, m):
    return ((x + m - 1) // m) * m


@functools.lru_cache(maxsize=1)
def _vmem_capacity_bytes():
    """Physical per-core VMEM (v5e/v6e: 128 MiB, v7x: 64 MiB). Fallback: 128 MiB."""
    try:
        cap = int(getattr(pltpu.get_tpu_info(), "vmem_capacity_bytes", 0))
        if cap > 0:
            return cap
    except Exception:
        pass
    return 128 * 1024 * 1024


def _resident_spec(shape):
    """BlockSpec for a grid-invariant operand: single-buffered (constant index_map,
    so default double-buffering would only waste VMEM, no DMA is lost)."""
    full = lambda i: tuple(0 for _ in shape)
    if hasattr(pl, "Buffered"):
        try:
            return pl.BlockSpec(shape, full, pipeline_mode=pl.Buffered(1))
        except TypeError:
            pass
    return pl.BlockSpec(shape, full)


def _layernorm(x, gamma, beta, n_live, mask):
    """LayerNorm over the last axis; statistics over only the first n_live lanes.

    `mask` is None when the feature axis is not padded. Padded lanes of `x` are
    exactly zero (padded weight columns / biases are zero) and the masked path
    returns exactly zero on the padded lanes.
    """
    if mask is None:
        mean = jnp.mean(x, axis=-1, keepdims=True)
        centered = x - mean
        var = jnp.mean(centered * centered, axis=-1, keepdims=True)
    else:
        inv_n = jnp.float32(1.0 / n_live)
        mean = jnp.sum(x * mask, axis=-1, keepdims=True) * inv_n
        centered = (x - mean) * mask
        var = jnp.sum(centered * centered, axis=-1, keepdims=True) * inv_n
    inv = lax.rsqrt(var + LN_EPS)
    return centered * inv * gamma + beta


def _gelu(x, use_tanh):
    if use_tanh:
        # Opt-in approximate form: tanh routes to the EUP (separate issue slot).
        return jax.nn.gelu(x, approximate=True)
    # torch.nn.GELU() default: exact erf formulation (semantic parity).
    return 0.5 * x * (1.0 + lax.erf(x * jnp.float32(0.7071067811865476)))


def _projector_kernel(x_ref, w1_ref, w2_ref, vec_ref, o_ref, *,
                      n_live, use_bf16, use_tanh_gelu, n_sub, sub_rows):
    s_pad = o_ref.shape[-1]

    vecs = vec_ref[...].astype(jnp.float32)            # [8, s_pad]
    b1, g1, be1 = vecs[0:1], vecs[1:2], vecs[2:3]
    b2, g2, be2 = vecs[3:4], vecs[4:5], vecs[5:6]

    if s_pad == n_live:
        mask = None
    else:
        lane = lax.broadcasted_iota(jnp.int32, (1, s_pad), 1)
        mask = (lane < n_live).astype(jnp.float32)

    cdt = jnp.bfloat16 if use_bf16 else jnp.float32

    # Static sub-chunks give the scheduler independent dependency chains: the MXU
    # work of sub-chunk k+1 can overlap the LN/GELU (VPU/EUP) phase of sub-chunk k.
    for k in range(n_sub):
        r0 = k * sub_rows                               # static offset
        x = x_ref[pl.ds(r0, sub_rows), :].astype(cdt)
        # Linear 1: [sub, D] @ [D, S_pad] + [1, S_pad]   (f32 MXU accumulation)
        h = jnp.dot(x, w1_ref[...], preferred_element_type=jnp.float32) + b1
        h = _layernorm(h, g1, be1, n_live, mask)
        h = _gelu(h, use_tanh_gelu)
        # Linear 2: [sub, S_pad] @ [S_pad, S_pad] + [1, S_pad]
        h = jnp.dot(h.astype(cdt), w2_ref[...],
                    preferred_element_type=jnp.float32) + b2
        h = _layernorm(h, g2, be2, n_live, mask)
        o_ref[pl.ds(r0, sub_rows), :] = h.astype(o_ref.dtype)


def _step_vmem_bytes(tm, d, s_pad, x_bytes, out_bytes, w_bytes, n_sub):
    """Rough per-grid-step VMEM need used to pick a safe row tile."""
    x_buf = 2 * tm * d * x_bytes                        # double-buffered x tiles
    o_buf = 2 * tm * s_pad * out_bytes                  # double-buffered out tiles
    weights = (d * s_pad + s_pad * s_pad) * w_bytes + 8 * s_pad * 4   # single-buffered
    inter = 4 * max(tm // n_sub, 16) * s_pad * 4        # live f32 LN/GELU intermediates
    return x_buf + o_buf + weights + inter


@functools.partial(jax.jit, static_argnames=("tm", "use_bf16_matmul",
                                             "use_tanh_gelu", "return_padded"))
def project_single(hidden_state, params, tm=None, use_bf16_matmul=True,
                   use_tanh_gelu=False, return_padded=False):
    """hidden_state: [batch, seq, dim].  params: dict of one projection's weights.

    Feed bf16 hidden states from the producer if tolerable: the kernel accepts any
    float dtype and bf16 halves the x HBM traffic (no wrapper-side cast is added).
    """
    b, s, d = hidden_state.shape
    n = b * s
    x2d = hidden_state.reshape(n, d)

    shared = params["w1"].shape[1]
    s_pad = _round_up(shared, 128)                      # lane-dense feature axis

    vmem_cap = _vmem_capacity_bytes()
    small_vmem = vmem_cap <= 96 * 1024 * 1024           # v7x-like (64 MiB per TC)
    vmem_budget = int(vmem_cap * 0.75)                  # leave compiler headroom

    x_bytes = jnp.dtype(hidden_state.dtype).itemsize
    w_bytes = 2 if use_bf16_matmul else 4

    # --- generation-aware row tile (multiple of 16 covers bf16 sublane packing) ---
    n16 = _round_up(n, 16)
    tm_base = tm if tm is not None else (256 if small_vmem else 512)
    tm_eff = _round_up(max(16, min(tm_base, n16)), 16)
    while tm_eff > 16 and _step_vmem_bytes(tm_eff, d, s_pad, x_bytes, x_bytes,
                                           w_bytes, 2) > 0.9 * vmem_budget:
        tm_eff = max(16, _round_up(tm_eff // 2, 16))
    # TODO(synk): if the single-buffered W1+W2 alone exceed the VMEM budget (very
    # large dim/shared), add a grid axis tiling the weights instead of keeping both
    # fully resident.

    # v7x shares the "parallel" grid axis across its 2 TensorCores: make sure there
    # are at least 2 row steps so the second core is not idle.
    if small_vmem and pl.cdiv(n, tm_eff) < 2 and n16 >= 32:
        tm_eff = max(16, _round_up(n16 // 2, 16))

    # Intra-tile sub-chunking: 2-4 independent chains, each >= 64 rows.
    n_sub = 1
    for cand in (4, 2):
        if tm_eff % (cand * 16) == 0 and tm_eff // cand >= 64:
            n_sub = cand
            break
    sub_rows = tm_eff // n_sub

    # --- pad / pack parameters (wrapper-side; live-lane results unchanged) ---
    w1 = jnp.pad(params["w1"], ((0, 0), (0, s_pad - shared)))
    w2 = jnp.pad(params["w2"], ((0, s_pad - shared), (0, s_pad - shared)))

    def pad_vec(v, c=0.0):
        return jnp.pad(v.reshape(1, -1).astype(jnp.float32),
                       ((0, 0), (0, s_pad - shared)), constant_values=c)

    vecs = jnp.concatenate(
        [pad_vec(params["b1"]), pad_vec(params["g1"], 1.0), pad_vec(params["be1"]),
         pad_vec(params["b2"]), pad_vec(params["g2"], 1.0), pad_vec(params["be2"]),
         jnp.zeros((2, s_pad), jnp.float32)],
        axis=0)                                          # [8, s_pad]

    if use_bf16_matmul:
        w1 = w1.astype(jnp.bfloat16)
        w2 = w2.astype(jnp.bfloat16)

    kernel = functools.partial(_projector_kernel, n_live=shared,
                               use_bf16=use_bf16_matmul,
                               use_tanh_gelu=use_tanh_gelu,
                               n_sub=n_sub, sub_rows=sub_rows)

    out2d = pl.pallas_call(
        kernel,
        out_shape=jax.ShapeDtypeStruct((n, s_pad), hidden_state.dtype),
        grid_spec=pltpu.PrefetchScalarGridSpec(
            num_scalar_prefetch=0,
            grid=(pl.cdiv(n, tm_eff),),
            in_specs=[
                pl.BlockSpec((tm_eff, d), lambda i: (i, 0)),   # x rows (double-buffered)
                _resident_spec((d, s_pad)),                    # W1 (single-buffered)
                _resident_spec((s_pad, s_pad)),                # W2 (single-buffered)
                _resident_spec((8, s_pad)),                    # packed b/gamma/beta
            ],
            out_specs=pl.BlockSpec((tm_eff, s_pad), lambda i: (i, 0)),
        ),
        compiler_params=pltpu.CompilerParams(
            dimension_semantics=("parallel",),
            vmem_limit_bytes=vmem_budget,
        ),
    )(x2d, w1, w2, vecs)

    if return_padded or s_pad == shared:
        return out2d.reshape(b, s, s_pad)
    # TODO(synk): this slice is a separate full-output XLA pass (~2x output HBM
    # traffic); consumers that can handle the lane-padded [.., s_pad] slab should
    # pass return_padded=True (or pick shared as a multiple of 128).
    return out2d[:, :shared].reshape(b, s, shared)


def init_projector_params(key, model_dims, shared_dim):
    """Deterministic synthetic weights (same shapes as the PyTorch module)."""
    all_params = []
    for dim in model_dims:
        key, k1, k2, k3, k4 = jax.random.split(key, 5)
        p = {
            # nn.Linear stores weight as [out, in]; we keep [in, out] for x @ W.
            "w1": jax.random.normal(k1, (dim, shared_dim), jnp.float32) * (1.0 / jnp.sqrt(dim)),
            "b1": jax.random.normal(k2, (1, shared_dim), jnp.float32) * 0.01,
            "g1": jnp.ones((1, shared_dim), jnp.float32),
            "be1": jnp.zeros((1, shared_dim), jnp.float32),
            "w2": jax.random.normal(k3, (shared_dim, shared_dim), jnp.float32) * (1.0 / jnp.sqrt(shared_dim)),
            "b2": jax.random.normal(k4, (1, shared_dim), jnp.float32) * 0.01,
            "g2": jnp.ones((1, shared_dim), jnp.float32),
            "be2": jnp.zeros((1, shared_dim), jnp.float32),
        }
        all_params.append(p)
    return all_params


def semantic_projector_forward(hidden_states, all_params, use_bf16_matmul=True,
                               use_tanh_gelu=False):
    """Mirrors SemanticProjector.forward: list in -> list out."""
    # TODO(synk): fuse the per-model loop into one launch (group rows by dim, pad dim
    # to a common multiple of 128, and select each model's W1/W2 via scalar-prefetch
    # group offsets in the weight index_maps) to amortize launch / pipeline warm-up.
    return [project_single(hs, p, use_bf16_matmul=use_bf16_matmul,
                           use_tanh_gelu=use_tanh_gelu)
            for hs, p in zip(hidden_states, all_params)]


def _reference_forward(hidden_states, all_params):
    outs = []
    for hs, p in zip(hidden_states, all_params):
        x = hs.astype(jnp.float32)
        h = x @ p["w1"] + p["b1"]
        h = _layernorm(h, p["g1"], p["be1"], p["w1"].shape[1], None)
        h = _gelu(h, False)
        h = h @ p["w2"] + p["b2"]
        h = _layernorm(h, p["g2"], p["be2"], p["w2"].shape[1], None)
        outs.append(h.astype(hs.dtype))
    return outs


if __name__ == "__main__":
    key = jax.random.PRNGKey(0)

    # Small shapes: two "models" with different hidden dims, shared_dim = 64.
    model_dims = [32, 48]
    shared_dim = 64
    batch, seq = 2, 8

    kp, kx1, kx2 = jax.random.split(key, 3)
    all_params = init_projector_params(kp, model_dims, shared_dim)
    hidden_states = [
        jax.random.normal(kx1, (batch, seq, model_dims[0]), jnp.float32),
        jax.random.normal(kx2, (batch, seq, model_dims[1]), jnp.float32),
    ]

    refs = _reference_forward(hidden_states, all_params)

    # Exact f32-MXU path: must match the f32 reference tightly.
    outs_exact = semantic_projector_forward(hidden_states, all_params,
                                            use_bf16_matmul=False)
    outs_exact = [jax.block_until_ready(o) for o in outs_exact]
    for o, r in zip(outs_exact, refs):
        assert o.shape == (batch, seq, shared_dim)
        assert jnp.allclose(o, r, atol=1e-4, rtol=1e-4)

    # Default fast path: bf16 MXU feeds with f32 accumulation (looser tolerance).
    outs_fast = semantic_projector_forward(hidden_states, all_params,
                                           use_bf16_matmul=True)
    outs_fast = [jax.block_until_ready(o) for o in outs_fast]
    for o, r in zip(outs_fast, refs):
        assert o.shape == (batch, seq, shared_dim)
        assert jnp.allclose(o, r, atol=5e-2, rtol=5e-2)

    print("KERNEL_OK")
</pallas_src>

<mosaic_0001>
module attributes {stable_mosaic.version = 11 : i64} {
  func.func @_projector_kernel(%arg0: i32, %arg1: memref<16x32xf32, #tpu.memory_space<vmem>>, %arg2: memref<32x128xf32, #tpu.memory_space<vmem>>, %arg3: memref<128x128xf32, #tpu.memory_space<vmem>>, %arg4: memref<8x128xf32, #tpu.memory_space<vmem>>, %arg5: memref<16x128xf32, #tpu.memory_space<vmem>>) attributes {dimension_semantics = [#tpu.dimension_semantics<parallel>], iteration_bounds = array<i64: 1>, scalar_prefetch = 0 : i64, scratch_operands = 0 : i64, tpu.core_type = #tpu.core_type<tc>, window_params = [{transform_indices = @transform_0, window_bounds = array<i64: 16, 32>}, {pipeline_mode = #tpu.pipeline_mode<synchronous>, transform_indices = @transform_1, window_bounds = array<i64: 32, 128>}, {pipeline_mode = #tpu.pipeline_mode<synchronous>, transform_indices = @transform_2, window_bounds = array<i64: 128, 128>}, {pipeline_mode = #tpu.pipeline_mode<synchronous>, transform_indices = @transform_3, window_bounds = array<i64: 8, 128>}, {transform_indices = @transform_4, window_bounds = array<i64: 16, 128>}]} {
    %c0 = arith.constant 0 : index
    %c0_0 = arith.constant 0 : index
    %0 = vector.load %arg4[%c0, %c0_0] : memref<8x128xf32, #tpu.memory_space<vmem>>, vector<8x128xf32>
    %1 = vector.extract_strided_slice %0 {offsets = [0, 0], sizes = [1, 128], strides = [1, 1]} : vector<8x128xf32> to vector<1x128xf32>
    %2 = vector.extract_strided_slice %0 {offsets = [1, 0], sizes = [1, 128], strides = [1, 1]} : vector<8x128xf32> to vector<1x128xf32>
    %3 = vector.extract_strided_slice %0 {offsets = [2, 0], sizes = [1, 128], strides = [1, 1]} : vector<8x128xf32> to vector<1x128xf32>
    %4 = vector.extract_strided_slice %0 {offsets = [3, 0], sizes = [1, 128], strides = [1, 1]} : vector<8x128xf32> to vector<1x128xf32>
    %5 = vector.extract_strided_slice %0 {offsets = [4, 0], sizes = [1, 128], strides = [1, 1]} : vector<8x128xf32> to vector<1x128xf32>
    %6 = vector.extract_strided_slice %0 {offsets = [5, 0], sizes = [1, 128], strides = [1, 1]} : vector<8x128xf32> to vector<1x128xf32>
    %7 = tpu.iota {dimensions = array<i32: 1>} : vector<1x128xi32>
    %c64_i32 = arith.constant 64 : i32
    %8 = vector.broadcast %c64_i32 : i32 to vector<1x128xi32>
    %9 = arith.cmpi slt, %7, %8 : vector<1x128xi32>
    %10 = arith.extui %9 : vector<1x128xi1> to vector<1x128xi32>
    %11 = arith.sitofp %10 : vector<1x128xi32> to vector<1x128xf32>
    %c0_1 = arith.constant 0 : index
    %c0_2 = arith.constant 0 : index
    %12 = vector.load %arg1[%c0_1, %c0_2] : memref<16x32xf32, #tpu.memory_space<vmem>>, vector<16x32xf32>
    %c0_3 = arith.constant 0 : index
    %c0_4 = arith.constant 0 : index
    %13 = vector.load %arg2[%c0_3, %c0_4] : memref<32x128xf32, #tpu.memory_space<vmem>>, vector<32x128xf32>
    %cst = arith.constant dense<0.000000e+00> : vector<16x128xf32>
    %14 = tpu.matmul %12, %13, %cst {dimension_numbers = #tpu.dot_dimension_numbers<[1], [0], [0], [1], [0, 0, 1, 1], [], []>} : vector<16x32xf32>, vector<32x128xf32>, vector<16x128xf32> -> vector<16x128xf32>
    %15 = vector.broadcast %1 : vector<1x128xf32> to vector<16x128xf32>
    %16 = arith.addf %14, %15 : vector<16x128xf32>
    %17 = vector.broadcast %11 : vector<1x128xf32> to vector<16x128xf32>
    %18 = arith.mulf %16, %17 : vector<16x128xf32>
    %cst_5 = arith.constant dense<0.000000e+00> : vector<16xf32>
    %19 = vector.multi_reduction <add>, %18, %cst_5 [1] : vector<16x128xf32> to vector<16xf32>
    %20 = vector.shape_cast %19 : vector<16xf32> to vector<16x1xf32>
    %cst_6 = arith.constant 1.562500e-02 : f32
    %21 = vector.broadcast %cst_6 : f32 to vector<16x1xf32>
    %22 = arith.mulf %20, %21 : vector<16x1xf32>
    %23 = vector.broadcast %22 : vector<16x1xf32> to vector<16x128xf32>
    %24 = arith.subf %16, %23 : vector<16x128xf32>
    %25 = vector.broadcast %11 : vector<1x128xf32> to vector<16x128xf32>
    %26 = arith.mulf %24, %25 : vector<16x128xf32>
    %27 = arith.mulf %26, %26 : vector<16x128xf32>
    %cst_7 = arith.constant dense<0.000000e+00> : vector<16xf32>
    %28 = vector.multi_reduction <add>, %27, %cst_7 [1] : vector<16x128xf32> to vector<16xf32>
    %29 = vector.shape_cast %28 : vector<16xf32> to vector<16x1xf32>
    %cst_8 = arith.constant 1.562500e-02 : f32
    %30 = vector.broadcast %cst_8 : f32 to vector<16x1xf32>
    %31 = arith.mulf %29, %30 : vector<16x1xf32>
    %cst_9 = arith.constant 9.99999974E-6 : f32
    %32 = vector.broadcast %cst_9 : f32 to vector<16x1xf32>
    %33 = arith.addf %31, %32 : vector<16x1xf32>
    %34 = math.rsqrt %33 : vector<16x1xf32>
    %35 = vector.broadcast %34 : vector<16x1xf32> to vector<16x128xf32>
    %36 = arith.mulf %26, %35 : vector<16x128xf32>
    %37 = vector.broadcast %2 : vector<1x128xf32> to vector<16x128xf32>
    %38 = arith.mulf %36, %37 : vector<16x128xf32>
    %39 = vector.broadcast %3 : vector<1x128xf32> to vector<16x128xf32>
    %40 = arith.addf %38, %39 : vector<16x128xf32>
    %cst_10 = arith.constant 5.000000e-01 : f32
    %41 = vector.broadcast %cst_10 : f32 to vector<16x128xf32>
    %42 = arith.mulf %41, %40 : vector<16x128xf32>
    %cst_11 = arith.constant 0.707106769 : f32
    %43 = vector.broadcast %cst_11 : f32 to vector<16x128xf32>
    %44 = arith.mulf %40, %43 : vector<16x128xf32>
    %45 = math.erf %44 : vector<16x128xf32>
    %cst_12 = arith.constant 1.000000e+00 : f32
    %46 = vector.broadcast %cst_12 : f32 to vector<16x128xf32>
    %47 = arith.addf %46, %45 : vector<16x128xf32>
    %48 = arith.mulf %42, %47 : vector<16x128xf32>
    %c0_13 = arith.constant 0 : index
    %c0_14 = arith.constant 0 : index
    %49 = vector.load %arg3[%c0_13, %c0_14] : memref<128x128xf32, #tpu.memory_space<vmem>>, vector<128x128xf32>
    %cst_15 = arith.constant dense<0.000000e+00> : vector<16x128xf32>
    %50 = tpu.matmul %48, %49, %cst_15 {dimension_numbers = #tpu.dot_dimension_numbers<[1], [0], [0], [1], [0, 0, 1, 1], [], []>} : vector<16x128xf32>, vector<128x128xf32>, vector<16x128xf32> -> vector<16x128xf32>
    %51 = vector.broadcast %4 : vector<1x128xf32> to vector<16x128xf32>
    %52 = arith.addf %50, %51 : vector<16x128xf32>
    %53 = vector.broadcast %11 : vector<1x128xf32> to vector<16x128xf32>
    %54 = arith.mulf %52, %53 : vector<16x128xf32>
    %cst_16 = arith.constant dense<0.000000e+00> : vector<16xf32>
    %55 = vector.multi_reduction <add>, %54, %cst_16 [1] : vector<16x128xf32> to vector<16xf32>
    %56 = vector.shape_cast %55 : vector<16xf32> to vector<16x1xf32>
    %cst_17 = arith.constant 1.562500e-02 : f32
    %57 = vector.broadcast %cst_17 : f32 to vector<16x1xf32>
    %58 = arith.mulf %56, %57 : vector<16x1xf32>
    %59 = vector.broadcast %58 : vector<16x1xf32> to vector<16x128xf32>
    %60 = arith.subf %52, %59 : vector<16x128xf32>
    %61 = vector.broadcast %11 : vector<1x128xf32> to vector<16x128xf32>
    %62 = arith.mulf %60, %61 : vector<16x128xf32>
    %63 = arith.mulf %62, %62 : vector<16x128xf32>
    %cst_18 = arith.constant dense<0.000000e+00> : vector<16xf32>
    %64 = vector.multi_reduction <add>, %63, %cst_18 [1] : vector<16x128xf32> to vector<16xf32>
    %65 = vector.shape_cast %64 : vector<16xf32> to vector<16x1xf32>
    %cst_19 = arith.constant 1.562500e-02 : f32
    %66 = vector.broadcast %cst_19 : f32 to vector<16x1xf32>
    %67 = arith.mulf %65, %66 : vector<16x1xf32>
    %cst_20 = arith.constant 9.99999974E-6 : f32
    %68 = vector.broadcast %cst_20 : f32 to vector<16x1xf32>
    %69 = arith.addf %67, %68 : vector<16x1xf32>
    %70 = math.rsqrt %69 : vector<16x1xf32>
    %71 = vector.broadcast %70 : vector<16x1xf32> to vector<16x128xf32>
    %72 = arith.mulf %62, %71 : vector<16x128xf32>
    %73 = vector.broadcast %5 : vector<1x128xf32> to vector<16x128xf32>
    %74 = arith.mulf %72, %73 : vector<16x128xf32>
    %75 = vector.broadcast %6 : vector<1x128xf32> to vector<16x128xf32>
    %76 = arith.addf %74, %75 : vector<16x128xf32>
    %c0_21 = arith.constant 0 : index
    %c0_22 = arith.constant 0 : index
    %77 = vector.load %arg5[%c0_21, %c0_22] : memref<16x128xf32, #tpu.memory_space<vmem>>, vector<16x128xf32>
    tpu.vector_store %arg5[%c0_21, %c0_22], %76 {strides = array<i32>} : memref<16x128xf32, #tpu.memory_space<vmem>>, vector<16x128xf32>,
    return
  }
  func.func @transform_0(%arg0: i32) -> (i32, i32) {
    %c0_i32 = arith.constant 0 : i32
    %c0_i32_0 = arith.constant 0 : i32
    return %arg0, %c0_i32 : i32, i32
  }
  func.func @transform_1(%arg0: i32) -> (i32, i32) {
    %c0_i32 = arith.constant 0 : i32
    %c0_i32_0 = arith.constant 0 : i32
    %c0_i32_1 = arith.constant 0 : i32
    return %c0_i32, %c0_i32_0 : i32, i32
  }
  func.func @transform_2(%arg0: i32) -> (i32, i32) {
    %c0_i32 = arith.constant 0 : i32
    %c0_i32_0 = arith.constant 0 : i32
    %c0_i32_1 = arith.constant 0 : i32
    return %c0_i32, %c0_i32_0 : i32, i32
  }
  func.func @transform_3(%arg0: i32) -> (i32, i32) {
    %c0_i32 = arith.constant 0 : i32
    %c0_i32_0 = arith.constant 0 : i32
    %c0_i32_1 = arith.constant 0 : i32
    return %c0_i32, %c0_i32_0 : i32, i32
  }
  func.func @transform_4(%arg0: i32) -> (i32, i32) {
    %c0_i32 = arith.constant 0 : i32
    %c0_i32_0 = arith.constant 0 : i32
    return %arg0, %c0_i32 : i32, i32
  }
}

</mosaic_0001>

<bundles_post_ra>
// kernel: project_single.1
= control target key start
LH: loop header
LB: loop body
LE: loop exit
PB: predicated region body
PF: predicated region fallthrough
CT: control target
= control target key end

     0   :  { %vm30_vm0 = vcmask 261120   ;;  %v18_v6 = vlaneseq  ;;  %v328_v13 = vmov 0.0   ;;  %s475_s1 = inlined_call_operand.vmem [shape: f32[32,128], index: 1, kind: input, shape index: {}]   ;;  %s476_s0 = inlined_call_operand.vmem [shape: f32[16,32], index: 0, kind: input, shape index: {}]   ;;  %s477_s3 = inlined_call_operand.vmem [shape: f32[8,128], index: 3, kind: input, shape index: {}]   ;;  %s478_s2 = inlined_call_operand.vmem [shape: f32[128,128], index: 2, kind: input, shape index: {}]   ;;  %s479_s4 = inlined_call_operand.vmem [shape: f32[16,128], index: 4, kind: output, shape index: {}]  }
   0x1   :  { %v28_v0 = vld [vmem:[%s475_s1 + $0x18] sm:$0xff]  ;;  %v27_v1 = vld [vmem:[%s475_s1 + $0x10] sm:$0xff]  ;;  %v26_v2 = vld [vmem:[%s475_s1 + $0x8] sm:$0xff] }
   0x2   :  { %49 = vmatpush.msra.mxu0 %v28_v0  ;;  %v25_v3 = vld [vmem:[%s475_s1] sm:$0xff]  ;;  %v24_v5 = vld [vmem:[%s476_s0 + $0x8] sm:$0xff]  ;;  %v19_v8 = vand.u32 127, %v18_v6  ;;  %v213_v28 = vld [vmem:[%s478_s2 + $0x78] sm:$0xff] }
   0x3   :  { %v23_v4 = vld [vmem:[%s476_s0] sm:$0xff]  ;;  %v212_v29 = vld [vmem:[%s478_s2 + $0x70] sm:$0xff]  ;;  %299 = vmatpush.msra.mxu2 %v213_v28  ;;  %215 = vmatpush.msra.mxu1 %v213_v28  ;;  %v211_v31 = vld [vmem:[%s478_s2 + $0x68] sm:$0xff] }
   0x4   :  { %50 = vmatpush.msra.mxu0 %v27_v1  ;;  %v375_v9 = vld [vmem:[%s477_s3] sm:$0xff]  ;;  %vm20_vm1 = vcmp.lt.s32.totalorder %v19_v8, 64  ;;  %v209_v35 = vld [vmem:[%s478_s2 + $0x58] sm:$0xff]  ;;  %v208_v36 = vld [vmem:[%s478_s2 + $0x50] sm:$0xff] }
   0x5   :  { %v29_v10 = vperm.slane %v375_v9, 0  ;;  %v378_v14 = vsel %vm20_vm1, 1.0, %v328_v13  ;;  %300 = vmatpush.msra.mxu2 %v212_v29  ;;  %216 = vmatpush.msra.mxu1 %v212_v29  ;;  %v210_v33 = vld [vmem:[%s478_s2 + $0x60] sm:$0xff]  ;;  %v207_v38 = vld [vmem:[%s478_s2 + $0x48] sm:$0xff]  ;;  %v205_v44 = vld [vmem:[%s478_s2 + $0x38] sm:$0xff]  ;;  %v104_v55 = vperm.slane %v375_v9, 1 }
   0x6   :  { %51 = vmatpush.msra.mxu0 %v26_v2  ;;  %v206_v40 = vld [vmem:[%s478_s2 + $0x40] sm:$0xff]  ;;  %v204_v46 = vld [vmem:[%s478_s2 + $0x30] sm:$0xff]  ;;  %v203_v48 = vld [vmem:[%s478_s2 + $0x28] sm:$0xff]  ;;  %v107_v60 = vperm.slane %v375_v9, 2 }
   0x7   :  { %301 = vmatpush.msra.mxu2 %v211_v31  ;;  %217 = vmatpush.msra.mxu1 %v211_v31  ;;  %v202_v50 = vld [vmem:[%s478_s2 + $0x20] sm:$0xff]  ;;  %v201_v54 = vld [vmem:[%s478_s2 + $0x18] sm:$0xff]  ;;  %v200_v58 = vld [vmem:[%s478_s2 + $0x10] sm:$0xff] }
   0x8   :  { %52 = vmatpush.msra.mxu0 %v25_v3  ;;  %v199_v62 = vld [vmem:[%s478_s2 + $0x8] sm:$0xff]  ;;  %v198_v1 = vld [vmem:[%s478_s2] sm:$0xff] }
   0x9   :  { %295 = vmatmul.msk.f32.vlgmr.msra.gmra.mxu0 %vm30_vm0, %v23_v4  ;;  %302 = vmatpush.msra.mxu2 %v210_v33 }
   0xa   :  { %218 = vmatpush.msra.mxu1 %v210_v33 }
   0xb   :  { %303 = vmatpush.msra.mxu2 %v209_v35 }
   0xc   :  { %219 = vmatpush.msra.mxu1 %v209_v35 }
   0xd   :  { %304 = vmatpush.msra.mxu2 %v208_v36 }
   0xe   :  { %220 = vmatpush.msra.mxu1 %v208_v36 }
   0xf   :  { %305 = vmatpush.msra.mxu2 %v207_v38 }
  0x10   :  { %221 = vmatpush.msra.mxu1 %v207_v38 }
  0x11   :  { %296 = vmatmul.msk.f32.gmra.mxu0 %vm30_vm0, %v24_v5  ;;  %306 = vmatpush.msra.mxu2 %v206_v40 }
  0x12   :  { %222 = vmatpush.msra.mxu1 %v206_v40 }
  0x13   :  { %307 = vmatpush.msra.mxu2 %v205_v44 }
  0x14   :  { %223 = vmatpush.msra.mxu1 %v205_v44 }
  0x15   :  { %308 = vmatpush.msra.mxu2 %v204_v46 }
  0x16   :  { %224 = vmatpush.msra.mxu1 %v204_v46 }
  0x17   :  { %309 = vmatpush.msra.mxu2 %v203_v48 }
  0x18   :  { %225 = vmatpush.msra.mxu1 %v203_v48 }
  0x19   :  { %310 = vmatpush.msra.mxu2 %v202_v50 }
  0x1a   :  { %226 = vmatpush.msra.mxu1 %v202_v50 }
  0x1b   :  { %311 = vmatpush.msra.mxu2 %v201_v54 }
  0x1c   :  { %227 = vmatpush.msra.mxu1 %v201_v54 }
  0x1d   :  { %312 = vmatpush.msra.mxu2 %v200_v58 }
  0x1e   :  { %228 = vmatpush.msra.mxu1 %v200_v58 }
  0x1f   :  { %313 = vmatpush.msra.mxu2 %v199_v62 }
  0x20   :  { %229 = vmatpush.msra.mxu1 %v199_v62 }
  0x21   :  { %314 = vmatpush.msra.mxu2 %v198_v1 }
  0x22   :  { %230 = vmatpush.msra.mxu1 %v198_v1 }
  0x86   :  { %v54_v7 = vpop.f32.mrf.mxu0 }
  0x87   :  { %v55_v16 = vadd.f32 %v54_v7, %v29_v10 }
  0x89   :  { %v60_v17 = vmul.f32 %v378_v14, %v55_v16 }
  0x8e   :  { %v57_v11 = vpop.f32.mrf.mxu0 }
  0x8f   :  { %v58_v12 = vadd.f32 %v57_v11, %v29_v10 }
  0x91   :  { %v61_v15 = vmul.f32 %v378_v14, %v58_v12 }
  0x93   :  { %64 = vadd.xlane.f32.xlu0 %v61_v15 }
  0x9b   :  { %62 = vadd.xlane.f32.xlu0 %v60_v17 }
 0x106   :  { %v65_v18 = vpop.xlane.xlu0 %64 }
 0x107   :  { %v67_v19 = vmul.f32 0.015625, %v65_v18 }
 0x109   :  { %v69_v20 = vsub.f32 %v58_v12, %v67_v19 }
 0x10b   :  { %v383_v21 = vmul.f32 %v378_v14, %v69_v20 }
 0x10d   :  { %v73_v22 = vmul.f32 %v383_v21, %v383_v21 }
 0x10e   :  { %v63_v23 = vpop.xlane.xlu0 %62 }
 0x10f   :  { %v66_v24 = vmul.f32 0.015625, %v63_v23  ;;  %76 = vadd.xlane.f32.xlu1 %v73_v22 }
 0x111   :  { %v68_v25 = vsub.f32 %v55_v16, %v66_v24 }
 0x113   :  { %v388_v26 = vmul.f32 %v378_v14, %v68_v25 }
 0x115   :  { %v72_v27 = vmul.f32 %v388_v26, %v388_v26 }
 0x117   :  { %74 = vadd.xlane.f32.xlu1 %v72_v27 }
 0x182   :  { %v77_v30 = vpop.xlane.xlu1 %76 }
 0x183   :  { %v79_v32 = vmul.f32 0.015625, %v77_v30 }
 0x185   :  { %v81_v34 = vadd.f32 1e-05, %v79_v32 }
 0x187   :  { %316 = vrsqrt.f32 %v81_v34  ;;  %vm98_vm3 = vweird.f32 %v81_v34 }
 0x18a   :  { %v75_v37 = vpop.xlane.xlu1 %74 }
 0x18b   :  { %v78_v39 = vmul.f32 0.015625, %v75_v37 }
 0x18d   :  { %v317_v41 = vpop.eup %316  ;;  %v80_v42 = vadd.f32 1e-05, %v78_v39 }
 0x18e   :  { %v93_v43 = vmul.f32 %v317_v41, %v81_v34  ;;  %vm99_vm2 = vweird.f32 %v317_v41 }
 0x18f   :  { %318 = vrsqrt.f32 %v80_v42  ;;  %vm100_vm4 = vmor %vm98_vm3, %vm99_vm2  ;;  %vm88_vm6 = vweird.f32 %v80_v42 }
 0x190   :  { %v94_v45 = vmul.f32 %v317_v41, %v93_v43 }
 0x192   :  { %v95_v47 = vmul.f32 0.5, %v94_v45 }
 0x194   :  { %v96_v49 = vsub.f32 1.5, %v95_v47 }
 0x195   :  { %v319_v51 = vpop.eup %318 }
 0x196   :  { %v97_v52 = vmul.f32 %v317_v41, %v96_v49  ;;  %v83_v53 = vmul.f32 %v319_v51, %v80_v42  ;;  %vm89_vm5 = vweird.f32 %v319_v51 }
 0x197   :  { %vm90_vm7 = vmor %vm88_vm6, %vm89_vm5 }
 0x198   :  { %v101_v56 = vsel %vm100_vm4, %v317_v41, %v97_v52  ;;  %v84_v57 = vmul.f32 %v319_v51, %v83_v53 }
 0x199   :  { %v103_v59 = vmul.f32 %v101_v56, %v383_v21 }
 0x19a   :  { %v85_v61 = vmul.f32 0.5, %v84_v57 }
 0x19b   :  { %v106_v63 = vmul.f32 %v104_v55, %v103_v59 }
 0x19c   :  { %v86_v0 = vsub.f32 1.5, %v85_v61 }
 0x19d   :  { %v443_v2 = vadd.f32 %v107_v60, %v106_v63 }
 0x19e   :  { %v87_v3 = vmul.f32 %v319_v51, %v86_v0 }
 0x19f   :  { %v446_v4 = vmul.f32 0.70710677, %v443_v2 }
 0x1a0   :  { %v91_v5 = vsel %vm90_vm7, %v319_v51, %v87_v3 }
 0x1a1   :  { %v154_v6 = vmul.f32 %v446_v4, %v446_v4  ;;  %v102_v7 = vmul.f32 %v91_v5, %v388_v26 }
 0x1a3   :  { %v155_v8 = vmin.f32 %v154_v6, 16.0  ;;  %v105_v10 = vmul.f32 %v104_v55, %v102_v7 }
 0x1a5   :  { %v156_v11 = vmul.f32 2.1237322e-06, %v155_v8  ;;  %v167_v12 = vmul.f32 3.8918573e-05, %v155_v8  ;;  %v451_v13 = vadd.f32 %v107_v60, %v105_v10 }
 0x1a7   :  { %v157_v15 = vadd.f32 0.00028619796, %v156_v11  ;;  %v168_v16 = vadd.f32 0.001143296, %v167_v12  ;;  %v454_v17 = vmul.f32 0.70710677, %v451_v13 }
 0x1a9   :  { %v158_v18 = vmul.f32 %v157_v15, %v155_v8  ;;  %v169_v19 = vmul.f32 %v168_v16, %v155_v8  ;;  %v114_v20 = vmul.f32 %v454_v17, %v454_v17  ;;  %v111_v16 = vmul.f32 0.5, %v443_v2 }
 0x1aa   :  { %v214_v2 = vperm.slane %v375_v9, 3 }
 0x1ab   :  { %v170_v21 = vadd.f32 0.014752088, %v169_v19  ;;  %v159_v22 = vadd.f32 0.0036580483, %v158_v18  ;;  %v115_v23 = vmin.f32 %v114_v20, 16.0 }
 0x1ad   :  { %v171_v24 = vmul.f32 %v170_v21, %v155_v8  ;;  %v116_v25 = vmul.f32 2.1237322e-06, %v115_v23  ;;  %v127_v26 = vmul.f32 3.8918573e-05, %v115_v23  ;;  %v160_v28 = vmul.f32 %v159_v22, %v155_v8 }
 0x1af   :  { %v172_v27 = vadd.f32 0.112945676, %v171_v24  ;;  %v117_v29 = vadd.f32 0.00028619796, %v116_v25  ;;  %v128_v30 = vadd.f32 0.001143296, %v127_v26 }
 0x1b0   :  { %v161_v35 = vadd.f32 0.05243302, %v160_v28  ;;  %v110_v26 = vmul.f32 0.5, %v451_v13 }
 0x1b1   :  { %v173_v31 = vmul.f32 %v172_v27, %v155_v8  ;;  %v118_v32 = vmul.f32 %v117_v29, %v115_v23  ;;  %v129_v33 = vmul.f32 %v128_v30, %v115_v23 }
 0x1b2   :  { %v162_v41 = vmul.f32 %v161_v35, %v155_v8 }
 0x1b3   :  { %v174_v34 = vadd.f32 0.4994258, %v173_v31  ;;  %v130_v36 = vadd.f32 0.014752088, %v129_v33  ;;  %v119_v38 = vadd.f32 0.0036580483, %v118_v32 }
 0x1b4   :  { %v163_v45 = vadd.f32 0.18741608, %v162_v41 }
 0x1b5   :  { %v175_v37 = vmul.f32 %v174_v34, %v155_v8  ;;  %v131_v39 = vmul.f32 %v130_v36, %v115_v23  ;;  %v120_v43 = vmul.f32 %v119_v38, %v115_v23 }
 0x1b6   :  { %v164_v50 = vmul.f32 %v163_v45, %v155_v8 }
 0x1b7   :  { %v176_v40 = vadd.f32 1.0, %v175_v37  ;;  %v132_v42 = vadd.f32 0.112945676, %v131_v39  ;;  %v121_v47 = vadd.f32 0.05243302, %v120_v43 }
 0x1b8   :  { %v165_v56 = vadd.f32 1.1283791, %v164_v50 }
 0x1b9   :  { %320 = vrcp.f32 %v176_v40  ;;  %v133_v44 = vmul.f32 %v132_v42, %v115_v23  ;;  %v122_v53 = vmul.f32 %v121_v47, %v115_v23  ;;  %v188_v55 = vand.u32 2147483648, %v176_v40 }
 0x1ba   :  { %v186_v58 = vand.u32 2147483647, %v176_v40  ;;  %vm182_vm9 = vweird.f32 %v176_v40  ;;  %v166_v63 = vmul.f32 %v165_v56, %v446_v4  ;;  %v282_v56 = vperm.slane %v375_v9, 4 }
 0x1bb   :  { %v134_v46 = vadd.f32 0.4994258, %v133_v44  ;;  %v123_v59 = vadd.f32 0.18741608, %v122_v53  ;;  %v189_v61 = vor.u32 1.1754944e-38, %v188_v55 }
 0x1bc   :  { %vm187_vm11 = vcmp.eq.f32.partialorder %v186_v58, 8.507059e+37 }
 0x1bd   :  { %v135_v48 = vmul.f32 %v134_v46, %v115_v23  ;;  %v124_v3 = vmul.f32 %v123_v59, %v115_v23  ;;  %v285_v59 = vperm.slane %v375_v9, 5 }
 0x1bf   :  { %v321_v49 = vpop.eup %320  ;;  %v136_v52 = vadd.f32 1.0, %v135_v48  ;;  %v125_v11 = vadd.f32 1.1283791, %v124_v3 }
 0x1c0   :  { %v178_v51 = vmul.f32 %v321_v49, %v176_v40  ;;  %vm183_vm8 = vweird.f32 %v321_v49 }
 0x1c1   :  { %322 = vrcp.f32 %v136_v52  ;;  %vm184_vm10 = vmor %vm182_vm9, %vm183_vm8  ;;  %v148_v10 = vand.u32 2147483648, %v136_v52  ;;  %v146_v15 = vand.u32 2147483647, %v136_v52  ;;  %vm142_vm13 = vweird.f32 %v136_v52 }
 0x1c2   :  { %v179_v54 = vsub.f32 1.0, %v178_v51  ;;  %v126_v21 = vmul.f32 %v125_v11, %v454_v17 }
 0x1c3   :  { %v149_v4 = vor.u32 1.1754944e-38, %v148_v10  ;;  %vm147_vm15 = vcmp.eq.f32.partialorder %v146_v15, 8.507059e+37 }
 0x1c4   :  { %v180_v57 = vmul.f32 %v321_v49, %v179_v54 }
 0x1c6   :  { %v181_v60 = vadd.f32 %v321_v49, %v180_v57 }
 0x1c7   :  { %v323_v62 = vpop.eup %322 }
 0x1c8   :  { %v185_v0 = vsel %vm184_vm10, %v321_v49, %v181_v60  ;;  %v138_v5 = vmul.f32 %v323_v62, %v136_v52  ;;  %vm143_vm12 = vweird.f32 %v323_v62 }
 0x1c9   :  { %v190_v1 = vsel %vm187_vm11, %v189_v61, %v185_v0  ;;  %vm144_vm14 = vmor %vm142_vm13, %vm143_vm12 }
 0x1ca   :  { %v191_v6 = vmul.f32 %v190_v1, %v166_v63  ;;  %v139_v7 = vsub.f32 1.0, %v138_v5 }
 0x1cc   :  { %v298_v8 = vclamps-f32 %v191_v6, 1.0  ;;  %v140_v12 = vmul.f32 %v323_v62, %v139_v7 }
 0x1ce   :  { %v195_v18 = vadd.f32 1.0, %v298_v8  ;;  %v141_v19 = vadd.f32 %v323_v62, %v140_v12 }
 0x1d0   :  { %v197_v20 = vmul.f32 %v195_v18, %v111_v16  ;;  %v145_v22 = vsel %vm144_vm14, %v323_v62, %v141_v19 }
 0x1d1   :  { %v150_v23 = vsel %vm147_vm15, %v149_v4, %v145_v22 }
 0x1d2   :  { %234 = vmatmul.f32.vlgmr.msra.gmra.mxu2 %v197_v20  ;;  %v151_v24 = vmul.f32 %v150_v23, %v126_v21 }
 0x1d4   :  { %v297_v25 = vclamps-f32 %v151_v24, 1.0 }
 0x1d6   :  { %v194_v27 = vadd.f32 1.0, %v297_v25 }
 0x1d8   :  { %v196_v28 = vmul.f32 %v194_v27, %v110_v26 }
 0x1da   :  { %231 = vmatmul.f32.vlgmr.msra.gmra.mxu1 %v196_v28 }
 0x255   :  { %v235_v32 = vpop.f32.mrf.mxu2 }
 0x256   :  { %v236_v17 = vadd.f32 %v235_v32, %v214_v2 }
 0x257   :  { %v232_v29 = vpop.f32.mrf.mxu1 }
 0x258   :  { %v233_v30 = vadd.f32 %v232_v29, %v214_v2  ;;  %v239_v33 = vmul.f32 %v378_v14, %v236_v17 }
 0x25a   :  { %v238_v31 = vmul.f32 %v378_v14, %v233_v30 }
 0x25c   :  { %240 = vadd.xlane.f32.xlu2 %v238_v31 }
 0x264   :  { %242 = vadd.xlane.f32.xlu2 %v239_v33 }
 0x2cf   :  { %v241_v34 = vpop.xlane.xlu2 %240 }
 0x2d0   :  { %v244_v35 = vmul.f32 0.015625, %v241_v34 }
 0x2d2   :  { %v246_v36 = vsub.f32 %v233_v30, %v244_v35 }
 0x2d4   :  { %v248_v13 = vmul.f32 %v378_v14, %v246_v36 }
 0x2d6   :  { %v250_v37 = vmul.f32 %v248_v13, %v248_v13 }
 0x2d7   :  { %v243_v38 = vpop.xlane.xlu2 %242 }
 0x2d8   :  { %v245_v39 = vmul.f32 0.015625, %v243_v38  ;;  %252 = vadd.xlane.f32.xlu0 %v250_v37 }
 0x2da   :  { %v247_v40 = vsub.f32 %v236_v17, %v245_v39 }
 0x2dc   :  { %v249_v41 = vmul.f32 %v378_v14, %v247_v40 }
 0x2de   :  { %v251_v42 = vmul.f32 %v249_v41, %v249_v41 }
 0x2e0   :  { %254 = vadd.xlane.f32.xlu1 %v251_v42 }
 0x34b   :  { %v253_v43 = vpop.xlane.xlu0 %252 }
 0x34c   :  { %v256_v44 = vmul.f32 0.015625, %v253_v43 }
 0x34e   :  { %v258_v45 = vadd.f32 1e-05, %v256_v44 }
 0x350   :  { %324 = vrsqrt.f32 %v258_v45  ;;  %vm266_vm1 = vweird.f32 %v258_v45 }
 0x353   :  { %v255_v46 = vpop.xlane.xlu1 %254 }
 0x354   :  { %v257_v47 = vmul.f32 0.015625, %v255_v46 }
 0x356   :  { %v325_v48 = vpop.eup %324  ;;  %v259_v49 = vadd.f32 1e-05, %v257_v47 }
 0x357   :  { %v261_v50 = vmul.f32 %v325_v48, %v258_v45  ;;  %vm267_vm0 = vweird.f32 %v325_v48 }
 0x358   :  { %326 = vrsqrt.f32 %v259_v49  ;;  %vm268_vm2 = vmor %vm266_vm1, %vm267_vm0  ;;  %vm276_vm4 = vweird.f32 %v259_v49 }
 0x359   :  { %v262_v51 = vmul.f32 %v325_v48, %v261_v50 }
 0x35b   :  { %v263_v52 = vmul.f32 0.5, %v262_v51 }
 0x35d   :  { %v264_v53 = vsub.f32 1.5, %v263_v52 }
 0x35e   :  { %v327_v54 = vpop.eup %326 }
 0x35f   :  { %v265_v55 = vmul.f32 %v325_v48, %v264_v53  ;;  %v271_v14 = vmul.f32 %v327_v54, %v259_v49  ;;  %vm277_vm3 = vweird.f32 %v327_v54 }
 0x360   :  { %vm278_vm5 = vmor %vm276_vm4, %vm277_vm3 }
 0x361   :  { %v269_v57 = vsel %vm268_vm2, %v325_v48, %v265_v55  ;;  %v272_v58 = vmul.f32 %v327_v54, %v271_v14 }
 0x362   :  { %v280_v60 = vmul.f32 %v269_v57, %v248_v13 }
 0x363   :  { %v273_v61 = vmul.f32 0.5, %v272_v58 }
 0x364   :  { %v283_v62 = vmul.f32 %v282_v56, %v280_v60 }
 0x365   :  { %v274_v63 = vsub.f32 1.5, %v273_v61 }
 0x366   :  { %v286_v0 = vadd.f32 %v285_v59, %v283_v62 }
 0x367   :  { %v275_v1 = vmul.f32 %v327_v54, %v274_v63 }
 0x368   :  { %288 = vst [vmem:[%s479_s4] sm:$0xff] %v286_v0 }
 0x369   :  { %v279_v3 = vsel %vm278_vm5, %v327_v54, %v275_v1 }
 0x36a   :  { %v281_v5 = vmul.f32 %v279_v3, %v249_v41 }
 0x36c   :  { %v284_v6 = vmul.f32 %v282_v56, %v281_v5 }
 0x36e   :  { %v287_v7 = vadd.f32 %v285_v59, %v284_v6 }
 0x370   :  { %289 = vst [vmem:[%s479_s4 + $0x8] sm:$0xff] %v287_v7 }

</bundles_post_ra>
